<compile_context>
chip_gen: v5e
topology: v5e:2x2
jax: 0.10.0
libtpu: 0.0.40
codegen_flags: <defaults>
</compile_context>

<pallas_src>
import jax
import jax.numpy as jnp
from jax import lax
from jax.experimental import pallas as pl
from jax.experimental.pallas import tpu as pltpu


def _round_up(x, m):
    return ((x + m - 1) // m) * m


def _choose_tiles(B, N, M, max_block_elems=1 << 20):
    """Pick (TB, TN, Bp, Np, Mp) so one (TB, TN, Mp) fp32 block is <= ~4 MiB."""
    Mp = _round_up(M, 128)                               # lane-dense minor dim
    rows_fit = max(8, (max_block_elems // Mp) // 8 * 8)  # rows per block, mult of 8
    TN = min(rows_fit, _round_up(N, 8))
    Np = _round_up(N, TN)
    if TN == Np:
        # whole row extent fits in one block -> fuse batch elements too
        TB = max(1, min(B, max_block_elems // (Np * Mp)))
    else:
        TB = 1
    Bp = _round_up(B, TB)
    # keep >= 2 grid steps for megacore (v7x) when the fused problem isn't tiny
    if TB == Bp and TN == Np and TB > 1 and Bp * Np * Mp * 4 > (1 << 19):
        TB = (TB + 1) // 2
        Bp = _round_up(B, TB)
    return TB, TN, Bp, Np, Mp


def _make_voting_kernel(alpha):
    def kernel(nrow_ref, ncol_ref, s_ref, o_ref):
        TB, TN, Mp = s_ref.shape
        row_off = pl.program_id(1) * TN

        n = nrow_ref[...]                                      # (TB, 1, 1) int32
        m = ncol_ref[...]                                      # (TB, 1, 1) int32
        row_ids = lax.broadcasted_iota(jnp.int32, (1, TN, 1), 1) + row_off
        col_ids = lax.broadcasted_iota(jnp.int32, (1, 1, Mp), 2)
        row_mask = row_ids < n                                 # (TB, TN, 1)
        col_mask = col_ids < m                                 # (TB, 1, Mp)

        x = s_ref[...].astype(jnp.float32) * jnp.float32(alpha)
        neg_big = jnp.float32(-1e30)        # NOT -inf: keeps the m==0 case NaN-free
        xm = jnp.where(col_mask, x, neg_big)
        mx = jnp.max(xm, axis=-1, keepdims=True)
        # Masked entries: exp(-1e30 - mx) underflows to exactly 0.0 in fp32,
        # so no second select is needed before the sum.
        e = jnp.exp(xm - mx)
        denom = jnp.sum(e, axis=-1, keepdims=True)             # always > 0
        inv = pl.reciprocal(denom, approx=True)                # EUP, per-row only
        inv = inv * (jnp.float32(2.0) - denom * inv)           # 1 Newton step -> fp32 accuracy
        sm = e * inv

        valid = jnp.logical_and(row_mask, col_mask)
        o_ref[...] = jnp.where(valid, sm, jnp.float32(0.0)).astype(o_ref.dtype)

    return kernel


def voting_pallas(s, nrow_gt, ncol_gt=None, alpha=200.0):
    """Pallas TPU forward of the GMN Voting layer.

    s       : (B, N, M) float array (permutation / doubly-stochastic matrix)
    nrow_gt : (B,) ints — effective rows per batch element
    ncol_gt : (B,) ints or None — effective cols per batch element
    """
    B, N, M = s.shape
    nrow = jnp.asarray(nrow_gt, jnp.int32)
    if ncol_gt is None:
        ncol = jnp.full((B,), M, dtype=jnp.int32)
    else:
        ncol = jnp.asarray(ncol_gt, jnp.int32)

    TB, TN, Bp, Np, Mp = _choose_tiles(B, N, M)

    # Pad to lane/sublane-friendly extents; padded rows/cols/batch elements are
    # zeroed by the in-kernel masks (padded nrow/ncol are 0), so padding is
    # correctness-free.
    if (Bp, Np, Mp) != (B, N, M):
        s_p = jnp.pad(s, ((0, Bp - B), (0, Np - N), (0, Mp - M)))
    else:
        s_p = s
    nrow_p = jnp.pad(nrow, (0, Bp - B)).reshape(Bp, 1, 1)
    ncol_p = jnp.pad(ncol, (0, Bp - B)).reshape(Bp, 1, 1)

    itemsize = jnp.dtype(s.dtype).itemsize
    cost = pl.CostEstimate(
        flops=6 * Bp * Np * Mp,
        transcendentals=Bp * Np * Mp,
        bytes_accessed=2 * Bp * Np * Mp * itemsize,
    )

    out_p = pl.pallas_call(
        _make_voting_kernel(alpha),
        out_shape=jax.ShapeDtypeStruct((Bp, Np, Mp), s.dtype),
        grid=(Bp // TB, Np // TN),
        in_specs=[
            pl.BlockSpec((TB, 1, 1), lambda bi, ri: (bi, 0, 0)),     # nrow
            pl.BlockSpec((TB, 1, 1), lambda bi, ri: (bi, 0, 0)),     # ncol
            pl.BlockSpec((TB, TN, Mp), lambda bi, ri: (bi, ri, 0)),  # s
        ],
        out_specs=pl.BlockSpec((TB, TN, Mp), lambda bi, ri: (bi, ri, 0)),
        compiler_params=pltpu.CompilerParams(
            dimension_semantics=("parallel", "parallel"),
            vmem_limit_bytes=32 * 1024 * 1024,
        ),
        cost_estimate=cost,
    )(nrow_p, ncol_p, s_p)

    if (Bp, Np, Mp) != (B, N, M):
        out_p = out_p[:B, :N, :M]
    return out_p


def voting_reference(s, nrow_gt, ncol_gt=None, alpha=200.0):
    """Pure-JAX reference mirroring the PyTorch loop."""
    B, N, M = s.shape
    out = jnp.zeros_like(s)
    for b in range(B):
        n = int(nrow_gt[b])
        m = M if ncol_gt is None else int(ncol_gt[b])
        if n == 0 or m == 0:
            continue
        block = jax.nn.softmax(alpha * s[b, :n, :m].astype(jnp.float32), axis=-1)
        out = out.at[b, :n, :m].set(block.astype(s.dtype))
    return out


if __name__ == "__main__":
    key = jax.random.PRNGKey(0)
    k1, k2 = jax.random.split(key)

    # Case 1: small graph-matching-like shape (the module's typical usage)
    B, N, M = 2, 8, 16
    s = jax.nn.softmax(jax.random.normal(k1, (B, N, M), dtype=jnp.float32), axis=-1)
    nrow_gt = jnp.array([5, 8], dtype=jnp.int32)
    ncol_gt = jnp.array([10, 16], dtype=jnp.int32)

    out = jax.block_until_ready(voting_pallas(s, nrow_gt, ncol_gt, alpha=200.0))
    ref = voting_reference(s, nrow_gt, ncol_gt, alpha=200.0)
    assert out.shape == ref.shape and out.dtype == ref.dtype
    assert jnp.allclose(out, ref, atol=1e-4, rtol=1e-4), "mismatch vs reference"

    # ncol_gt=None path
    out2 = jax.block_until_ready(voting_pallas(s, nrow_gt, None, alpha=200.0))
    ref2 = voting_reference(s, nrow_gt, None, alpha=200.0)
    assert jnp.allclose(out2, ref2, atol=1e-4, rtol=1e-4), "mismatch vs reference (ncol=None)"

    # Case 2: uneven shapes exercising batch/row/col padding
    B2, N2, M2 = 3, 24, 40
    s2 = jax.nn.softmax(jax.random.normal(k2, (B2, N2, M2), dtype=jnp.float32), axis=-1)
    nrow2 = jnp.array([24, 7, 13], dtype=jnp.int32)
    ncol2 = jnp.array([40, 11, 1], dtype=jnp.int32)
    out3 = jax.block_until_ready(voting_pallas(s2, nrow2, ncol2, alpha=200.0))
    ref3 = voting_reference(s2, nrow2, ncol2, alpha=200.0)
    assert jnp.allclose(out3, ref3, atol=1e-4, rtol=1e-4), "mismatch vs reference (padded case)"

    print("KERNEL_OK")
</pallas_src>

<mosaic_0001>
module attributes {stable_mosaic.version = 11 : i64} {
  func.func @kernel(%arg0: i32, %arg1: i32, %arg2: memref<2x1x1xi32, #tpu.memory_space<vmem>>, %arg3: memref<2x1x1xi32, #tpu.memory_space<vmem>>, %arg4: memref<2x8x128xf32, #tpu.memory_space<vmem>>, %arg5: memref<2x8x128xf32, #tpu.memory_space<vmem>>) attributes {dimension_semantics = [#tpu.dimension_semantics<parallel>, #tpu.dimension_semantics<parallel>], iteration_bounds = array<i64: 1, 1>, scalar_prefetch = 0 : i64, scratch_operands = 0 : i64, tpu.core_type = #tpu.core_type<tc>, window_params = [{transform_indices = @transform_0, window_bounds = array<i64: 2, 1, 1>}, {transform_indices = @transform_1, window_bounds = array<i64: 2, 1, 1>}, {transform_indices = @transform_2, window_bounds = array<i64: 2, 8, 128>}, {transform_indices = @transform_3, window_bounds = array<i64: 2, 8, 128>}]} {
    %c8_i32 = arith.constant 8 : i32
    %0 = arith.muli %arg1, %c8_i32 : i32
    %c0 = arith.constant 0 : index
    %c0_0 = arith.constant 0 : index
    %c0_1 = arith.constant 0 : index
    %1 = vector.load %arg2[%c0, %c0_0, %c0_1] : memref<2x1x1xi32, #tpu.memory_space<vmem>>, vector<2x1x1xi32>
    %c0_2 = arith.constant 0 : index
    %c0_3 = arith.constant 0 : index
    %c0_4 = arith.constant 0 : index
    %2 = vector.load %arg3[%c0_2, %c0_3, %c0_4] : memref<2x1x1xi32, #tpu.memory_space<vmem>>, vector<2x1x1xi32>
    %3 = tpu.iota {dimensions = array<i32: 1>} : vector<1x8x1xi32>
    %4 = vector.broadcast %0 : i32 to vector<1x8x1xi32>
    %5 = arith.addi %3, %4 : vector<1x8x1xi32>
    %6 = tpu.iota {dimensions = array<i32: 2>} : vector<1x1x128xi32>
    %7 = vector.broadcast %5 : vector<1x8x1xi32> to vector<2x8x1xi32>
    %8 = vector.broadcast %1 : vector<2x1x1xi32> to vector<2x8x1xi32>
    %9 = arith.cmpi slt, %7, %8 : vector<2x8x1xi32>
    %10 = vector.broadcast %6 : vector<1x1x128xi32> to vector<2x1x128xi32>
    %11 = vector.broadcast %2 : vector<2x1x1xi32> to vector<2x1x128xi32>
    %12 = arith.cmpi slt, %10, %11 : vector<2x1x128xi32>
    %c0_5 = arith.constant 0 : index
    %c0_6 = arith.constant 0 : index
    %c0_7 = arith.constant 0 : index
    %13 = vector.load %arg4[%c0_5, %c0_6, %c0_7] : memref<2x8x128xf32, #tpu.memory_space<vmem>>, vector<2x8x128xf32>
    %cst = arith.constant 2.000000e+02 : f32
    %14 = vector.broadcast %cst : f32 to vector<2x8x128xf32>
    %15 = arith.mulf %13, %14 : vector<2x8x128xf32>
    %cst_8 = arith.constant -1.000000e+30 : f32
    %16 = vector.shape_cast %12 : vector<2x1x128xi1> to vector<2x1x128xi1>
    %17 = vector.broadcast %16 : vector<2x1x128xi1> to vector<2x8x128xi1>
    %18 = vector.broadcast %cst_8 : f32 to vector<2x8x128xf32>
    %19 = arith.select %17, %15, %18 : vector<2x8x128xi1>, vector<2x8x128xf32>
    %cst_9 = arith.constant dense<0xFF800000> : vector<2x8xf32>
    %20 = vector.multi_reduction <maximumf>, %19, %cst_9 [2] : vector<2x8x128xf32> to vector<2x8xf32>
    %21 = vector.shape_cast %20 : vector<2x8xf32> to vector<2x8x1xf32>
    %22 = vector.broadcast %21 : vector<2x8x1xf32> to vector<2x8x128xf32>
    %23 = arith.subf %19, %22 : vector<2x8x128xf32>
    %24 = math.exp %23 : vector<2x8x128xf32>
    %cst_10 = arith.constant dense<0.000000e+00> : vector<2x8xf32>
    %25 = vector.multi_reduction <add>, %24, %cst_10 [2] : vector<2x8x128xf32> to vector<2x8xf32>
    %26 = vector.shape_cast %25 : vector<2x8xf32> to vector<2x8x1xf32>
    %27 = tpu.reciprocal %26 {approx = true} : vector<2x8x1xf32> -> vector<2x8x1xf32>
    %28 = arith.mulf %26, %27 : vector<2x8x1xf32>
    %cst_11 = arith.constant 2.000000e+00 : f32
    %29 = vector.broadcast %cst_11 : f32 to vector<2x8x1xf32>
    %30 = arith.subf %29, %28 : vector<2x8x1xf32>
    %31 = arith.mulf %27, %30 : vector<2x8x1xf32>
    %32 = vector.broadcast %31 : vector<2x8x1xf32> to vector<2x8x128xf32>
    %33 = arith.mulf %24, %32 : vector<2x8x128xf32>
    %34 = vector.broadcast %9 : vector<2x8x1xi1> to vector<2x8x128xi1>
    %35 = vector.broadcast %12 : vector<2x1x128xi1> to vector<2x8x128xi1>
    %36 = arith.andi %34, %35 : vector<2x8x128xi1>
    %cst_12 = arith.constant 0.000000e+00 : f32
    %37 = vector.broadcast %cst_12 : f32 to vector<2x8x128xf32>
    %38 = arith.select %36, %33, %37 : vector<2x8x128xi1>, vector<2x8x128xf32>
    %c0_13 = arith.constant 0 : index
    %c0_14 = arith.constant 0 : index
    %c0_15 = arith.constant 0 : index
    %39 = vector.load %arg5[%c0_13, %c0_14, %c0_15] : memref<2x8x128xf32, #tpu.memory_space<vmem>>, vector<2x8x128xf32>
    tpu.vector_store %arg5[%c0_13, %c0_14, %c0_15], %38 {strides = array<i32>} : memref<2x8x128xf32, #tpu.memory_space<vmem>>, vector<2x8x128xf32>,
    return
  }
  func.func @transform_0(%arg0: i32, %arg1: i32) -> (i32, i32, i32) {
    %c0_i32 = arith.constant 0 : i32
    %c0_i32_0 = arith.constant 0 : i32
    %c0_i32_1 = arith.constant 0 : i32
    return %arg0, %c0_i32, %c0_i32_0 : i32, i32, i32
  }
  func.func @transform_1(%arg0: i32, %arg1: i32) -> (i32, i32, i32) {
    %c0_i32 = arith.constant 0 : i32
    %c0_i32_0 = arith.constant 0 : i32
    %c0_i32_1 = arith.constant 0 : i32
    return %arg0, %c0_i32, %c0_i32_0 : i32, i32, i32
  }
  func.func @transform_2(%arg0: i32, %arg1: i32) -> (i32, i32, i32) {
    %c0_i32 = arith.constant 0 : i32
    %c0_i32_0 = arith.constant 0 : i32
    return %arg0, %arg1, %c0_i32 : i32, i32, i32
  }
  func.func @transform_3(%arg0: i32, %arg1: i32) -> (i32, i32, i32) {
    %c0_i32 = arith.constant 0 : i32
    %c0_i32_0 = arith.constant 0 : i32
    return %arg0, %arg1, %c0_i32 : i32, i32, i32
  }
}

</mosaic_0001>

<bundles_post_ra>
// kernel: tpu_custom_call.1
= control target key start
LH: loop header
LB: loop body
LE: loop exit
PB: predicated region body
PF: predicated region fallthrough
CT: control target
= control target key end

     0   :  { %8 = vsyncpa [#allocation3], 0  ;;  %s259_s0 = inlined_call_operand.vmem [shape: s32[2,1,1], index: 0, kind: input, shape index: {}]   ;;  %s260_s1 = inlined_call_operand.vmem [shape: s32[2,1,1], index: 1, kind: input, shape index: {}]   ;;  %s261_s2 = inlined_call_operand.hbm [shape: f32[2,8,128], index: 2, kind: input, shape index: {}]   ;;  %s262_s3 = inlined_call_operand.hbm [shape: f32[2,8,128], index: 3, kind: output, shape index: {}]  }
   0x1   :  { %9 = vsyncpa [#allocation4], 0  ;;  %s18_s14 = sshll.u32 %s261_s2, 4  ;;  %s194_s15 = smov [#allocation2]   ;;  %s19_s14 = int_to_ptr.hbm [resolvable:$true] %s18_s14 }
   0x2   :  { %s20_s16 = sshll.u32 %s194_s15, 4  ;;  %s195_s17 = smov 128   ;;  %s21_s16 = int_to_ptr.vmem [resolvable:$true] %s20_s16 }
   0x3   :  { %s196_s18 = smov 8  }
   0x4   :  { %26 = dma.hbm_to_vmem [thread:$0]  %s19_s14, 256, %s21_s16, [#allocation3], %s195_s17, %s195_s17, %s196_s18  }
   0x5   :  { %190 = dma.done.wait [#allocation3], 256  }
   0x6   :  { %191 = vsyncadd [#allocation3], 4294967040  ;;  %v197_v0 = vmov 0   ;;  %v34_v1 = vld [vmem:[%s260_s1] sm:$0x1]  ;;  %v36_v2 = vlaneseq  ;;  %v57_v14 = vld [vmem:[#allocation2 + $0x8] sm:$0xff] }
   0x7   :  { %130 = vset.pattern.permute.xlu0 %v197_v0  ;;  %131 = vset.pattern.permute.xlu1 %v197_v0  ;;  %v35_v3 = vld [vmem:[%s260_s1 + $0x1] sm:$0x1]  ;;  %v132_v5 = vld [vmem:[%s259_s0] ss:$0 sm:$0xff]  ;;  %v59_v16 = vmul.f32 200.0, %v57_v14  ;;  %s112_s28 = sshll.u32 %s262_s3, 4  ;;  %s113_s28 = int_to_ptr.hbm [resolvable:$true] %s112_s28 }
   0x8   :  { %47 = vperm.xlu0 %130, %v34_v1   ;;  %v37_v4 = vshrl.u32 %v36_v2, 7  ;;  %v56_v7 = vld [vmem:[#allocation2] sm:$0xff]  ;;  %v41_v8 = vand.u32 127, %v36_v2 }
   0x9   :  { %v58_v10 = vmul.f32 200.0, %v56_v7  ;;  %v133_v20 = vld [vmem:[%s259_s0 + $0x1] ss:$0 sm:$0xff]  ;;  %s198_s0 = smov [#allocation5]  }
   0xa   :  { %vm44_vm0 = vcmp.lt.s32.totalorder %v37_v4, %v132_v5  ;;  %vm45_vm3 = vcmp.lt.s32.totalorder %v37_v4, %v133_v20  ;;  %s110_s25 = sshll.u32 %s198_s0, 4  ;;  %s111_s25 = int_to_ptr.vmem [resolvable:$true] %s110_s25 }
   0xb   :  { %v90_v6 = vsel %vm44_vm0, 1, %v197_v0  ;;  %v91_v21 = vsel %vm45_vm3, 1, %v197_v0 }
  0x10   :  { %51 = vperm.xlu0 %130, %v35_v3  }
  0x18   :  { %93 = vperm.xlu0 %130, %v90_v6  }
  0x7a   :  { %v48_v9 = vpop.permute.xlu0 %47 }
  0x7b   :  { %v49_v11 = vperm.slane %v48_v9, 0 }
  0x7d   :  { %vm234_vm1 = vcmp.lt.s32.totalorder %v41_v8, %v49_v11 }
  0x7e   :  { %v64_v13 = vsel %vm234_vm1, %v58_v10, -1e+30 }
  0x7f   :  { %66 = vmax.xlane.f32.xlu1 %v64_v13 }
  0x82   :  { %v52_v15 = vpop.permute.xlu0 %51 }
  0x83   :  { %v53_v17 = vperm.slane %v52_v15, 0 }
  0x85   :  { %vm240_vm2 = vcmp.lt.s32.totalorder %v41_v8, %v53_v17 }
  0x86   :  { %v65_v19 = vsel %vm240_vm2, %v59_v16, -1e+30 }
  0x87   :  { %68 = vmax.xlane.f32.xlu1 %v65_v19 }
  0x8a   :  { %v94_v34 = vpop.permute.xlu0 %93 }
  0x8b   :  { %vm98_vm4 = vcmp.eq.s32.totalorder %v94_v34, 1 }
  0x8c   :  { %vm100_vm5 = vmand %vm98_vm4, %vm234_vm1 }
  0xa0   :  { %96 = vperm.xlu1 %131, %v91_v21  }
  0xf2   :  { %v67_v22 = vpop.xlane.xlu1 %66 }
  0xf3   :  { %v70_v23 = vsub.f32 %v64_v13, %v67_v22 }
  0xf5   :  { %v72_v24 = vmul.f32 1.442695, %v70_v23 }
  0xf7   :  { %134 = vpow2.f32 %v72_v24 }
  0xfa   :  { %v69_v25 = vpop.xlane.xlu1 %68 }
  0xfb   :  { %v71_v26 = vsub.f32 %v65_v19, %v69_v25 }
  0xfd   :  { %v135_v27 = vpop.eup %134  ;;  %v74_v28 = vmul.f32 1.442695, %v71_v26 }
  0xfe   :  { %76 = vadd.xlane.f32.xlu2 %v135_v27 }
  0xff   :  { %136 = vpow2.f32 %v74_v28 }
 0x105   :  { %v137_v29 = vpop.eup %136 }
 0x106   :  { %78 = vadd.xlane.f32.xlu2 %v137_v29 }
 0x112   :  { %v97_v41 = vpop.permute.xlu1 %96 }
 0x113   :  { %vm99_vm6 = vcmp.eq.s32.totalorder %v97_v41, 1 }
 0x114   :  { %vm101_vm7 = vmand %vm99_vm6, %vm240_vm2 }
 0x171   :  { %v77_v30 = vpop.xlane.xlu2 %76 }
 0x172   :  { %138 = vrcp.f32 %v77_v30 }
 0x178   :  { %v139_v31 = vpop.eup %138 }
 0x179   :  { %v82_v32 = vmul.f32 %v139_v31, %v77_v30  ;;  %v79_v33 = vpop.xlane.xlu2 %78 }
 0x17a   :  { %140 = vrcp.f32 %v79_v33 }
 0x17b   :  { %v84_v35 = vsub.f32 2.0, %v82_v32 }
 0x17d   :  { %v86_v36 = vmul.f32 %v139_v31, %v84_v35 }
 0x17f   :  { %v88_v37 = vmul.f32 %v135_v27, %v86_v36 }
 0x180   :  { %v141_v38 = vpop.eup %140 }
 0x181   :  { %v83_v39 = vmul.f32 %v141_v38, %v79_v33  ;;  %v102_v40 = vsel %vm100_vm5, %v88_v37, 0.0 }
 0x182   :  { %104 = vst [vmem:[#allocation5] sm:$0xff] %v102_v40 }
 0x183   :  { %v85_v42 = vsub.f32 2.0, %v83_v39 }
 0x185   :  { %v87_v43 = vmul.f32 %v141_v38, %v85_v42 }
 0x187   :  { %v89_v44 = vmul.f32 %v137_v29, %v87_v43 }
 0x189   :  { %v103_v45 = vsel %vm101_vm7, %v89_v44, 0.0 }
 0x18a   :  { %105 = vst [vmem:[#allocation5 + $0x8] sm:$0xff] %v103_v45 }
 0x18b   :  { %118 = dma.vmem_to_hbm [thread:$0]  %s111_s25, 256, %s113_s28, [#allocation4], %s195_s17, %s195_s17, %s196_s18  }
 0x18c   :  { %192 = dma.done.wait [#allocation4], 256  }
 0x18d   :  { %193 = vsyncadd [#allocation4], 4294967040 }
 0x18e   :  { %123 = vsyncpa [#allocation3], 1 }
 0x18f   :  { %124 = vsyncpa [#allocation4], 1 }

</bundles_post_ra>
